<compile_context>
chip_gen: v7x
topology: tpu7x:2x2x1
jax: 0.10.0
libtpu: 0.0.40
codegen_flags: <defaults>
</compile_context>

<pallas_src>
from functools import partial

import jax
import jax.numpy as jnp
from jax.experimental import pallas as pl
from jax.experimental.pallas import tpu as pltpu


def _pem_kernel(x_ref, w1_ref, b1_ref, w2_ref, b2_ref, o_ref, *, hw):
    # x_ref: (bt, in_c, hw_pad) batch-major, spatial on the lane axis.
    x = x_ref[...]
    bt, _, hw_pad = x.shape
    w1 = w1_ref[...]                                   # (inter_c, in_c)
    w2 = w2_ref[...]                                   # (out_c, inter_c)

    # conv1 / conv2 (1x1 convs == channel matmuls) as batched MXU contractions.
    # Weights are broadcast over the batch tile (tiny: bt*C*C elements, done once).
    w1b = jnp.broadcast_to(w1, (bt,) + w1.shape)
    inter = jax.lax.dot_general(
        w1b, x, dimension_numbers=(((2,), (1,)), ((0,), (0,))),
        preferred_element_type=jnp.float32) + b1_ref[...]      # (bt, inter_c, hw_pad)

    w2b = jnp.broadcast_to(w2, (bt,) + w2.shape)
    out2 = jax.lax.dot_general(
        w2b, inter, dimension_numbers=(((2,), (1,)), ((0,), (0,))),
        preferred_element_type=jnp.float32) + b2_ref[...]      # (bt, out_c, hw_pad)

    # Single hoisted mask: zero padded spatial columns so they don't pollute
    # the gram contraction (inter's padded lanes carry bias-derived values).
    if hw_pad != hw:
        col = jax.lax.broadcasted_iota(jnp.int32, out2.shape, 2)
        out2 = jnp.where(col < hw, out2, 0.0)

    # Gram over spatial positions, batched: contract both operands on their
    # LAST dim so the MXU consumes the transposed RHS directly (no relayout).
    gram = jax.lax.dot_general(
        out2, out2, dimension_numbers=(((2,), (2,)), ((0,), (0,))),
        preferred_element_type=jnp.float32)                    # (bt, out_c, out_c)

    # Exact softmax over the last dim (denominator is only (bt, out_c, 1);
    # exact divide is essentially free and keeps bit-tight accuracy).
    m = jnp.max(gram, axis=-1, keepdims=True)
    e = jnp.exp(gram - m)
    attn = e / jnp.sum(e, axis=-1, keepdims=True)

    # Attend over inter feats: (bt, out_c, out_c) @ (bt, inter_c, hw_pad).
    res = jax.lax.dot_general(
        attn, inter, dimension_numbers=(((2,), (1,)), ((0,), (0,))),
        preferred_element_type=jnp.float32)                    # (bt, out_c, hw_pad)
    o_ref[...] = res.astype(o_ref.dtype)


def _vmem_capacity_bytes():
    """Physical VMEM of the current device; conservative fallback (v7x = 64 MiB)."""
    try:
        cap = getattr(pltpu.get_tpu_info(), "vmem_capacity_bytes", None)
        if cap:
            return int(cap)
    except Exception:
        pass
    return 64 << 20


def _pick_batch_tile(b, per_batch_bytes, vmem_budget_bytes):
    """Largest divisor of b that fits the VMEM budget AND keeps >=8 grid steps
    (>=4 per TC on v7x) so the BlockSpec pipeline has something to prefetch."""
    max_by_vmem = max(1, vmem_budget_bytes // max(per_batch_bytes, 1))
    max_by_steps = max(1, b // 8)
    cap = max(1, min(max_by_vmem, max_by_steps, b))
    for bt in range(cap, 0, -1):
        if b % bt == 0:
            return bt
    return 1


def pem_forward(x, w1, b1, w2, b2, *, batch_tile=None):
    """x: (B, in_c, H, W) float32.  Returns (B, out_c, H, W)."""
    b, in_c, h, w = x.shape
    inter_c = w1.shape[0]
    out_c = w2.shape[0]
    assert inter_c == out_c, "PEM final bmm requires inter_channels == out_channels"
    hw = h * w
    # Lane-dense layout: spatial dim padded up to a multiple of 128 (skipped if
    # already aligned -> no extra HBM pass).
    hw_pad = -(-hw // 128) * 128

    # Per-batch VMEM working set (f32): double-buffered x tile + double-buffered
    # out tile + inter + out2/res temporaries, with ~30% headroom.
    per_batch_bytes = int(1.3 * (2 * in_c + 2 * out_c + inter_c + 2 * out_c)
                          * hw_pad * 4)
    vmem_cap = _vmem_capacity_bytes()
    vmem_budget = int(0.4 * vmem_cap)          # ~24 MiB on v7x, ~50 MiB on v5e/v6e

    bt = _pick_batch_tile(b, per_batch_bytes, vmem_budget) if batch_tile is None \
        else batch_tile
    assert b % bt == 0, "batch_tile must divide the batch size"
    n_steps = b // bt

    # Batch-major slab (no transposes; pad only when HW is not lane-aligned).
    x3 = x.reshape(b, in_c, hw)
    if hw_pad != hw:
        x3 = jnp.pad(x3, ((0, 0), (0, 0), (0, hw_pad - hw)))

    b1_2d = b1.reshape(inter_c, 1)
    b2_2d = b2.reshape(out_c, 1)

    # Only raise the scoped-VMEM limit when the per-step working set needs it,
    # and never above ~85% of the device's physical VMEM.
    step_bytes = per_batch_bytes * bt
    vmem_limit = None
    if step_bytes > (12 << 20):
        vmem_limit = min(max(int(1.5 * step_bytes), 32 << 20), int(0.85 * vmem_cap))

    kernel = partial(_pem_kernel, hw=hw)
    out3 = pl.pallas_call(
        kernel,
        out_shape=jax.ShapeDtypeStruct((b, out_c, hw_pad), x.dtype),
        grid=(n_steps,),
        in_specs=[
            pl.BlockSpec((bt, in_c, hw_pad), lambda i: (i, 0, 0)),   # x batch tile
            pl.BlockSpec((inter_c, in_c), lambda i: (0, 0)),         # conv1 weight
            pl.BlockSpec((inter_c, 1), lambda i: (0, 0)),            # conv1 bias
            pl.BlockSpec((out_c, inter_c), lambda i: (0, 0)),        # conv2 weight
            pl.BlockSpec((out_c, 1), lambda i: (0, 0)),              # conv2 bias
        ],
        out_specs=pl.BlockSpec((bt, out_c, hw_pad), lambda i: (i, 0, 0)),
        compiler_params=pltpu.CompilerParams(
            dimension_semantics=("parallel",),
            vmem_limit_bytes=vmem_limit),
    )(x3, w1, b1_2d, w2, b2_2d)

    if hw_pad != hw:
        out3 = out3[:, :, :hw]
    return out3.reshape(b, out_c, h, w)


def pem_reference(x, w1, b1, w2, b2):
    """Pure-JAX reference mirroring the PyTorch forward (for verification)."""
    b, c, h, w = x.shape
    out_c = w2.shape[0]
    x_flat = x.reshape(b, c, h * w)
    inter = jnp.einsum("oc,bcn->bon", w1, x_flat) + b1[None, :, None]
    out = jnp.einsum("oc,bcn->bon", w2, inter) + b2[None, :, None]
    gram = jnp.einsum("bon,bpn->bop", out, out)
    attn = jax.nn.softmax(gram, axis=-1)
    res = jnp.einsum("bop,bpn->bon", attn, inter)
    return res.reshape(b, out_c, h, w)


if __name__ == "__main__":
    # Small shapes consistent with the module: B=2, in_channels=4,
    # inter_channels=out_channels=8, spatial 16x16.
    B, IN_C, INTER_C, OUT_C, H, W = 2, 4, 8, 8, 16, 16

    key = jax.random.PRNGKey(0)
    kx, kw1, kb1, kw2, kb2 = jax.random.split(key, 5)

    x = jax.random.normal(kx, (B, IN_C, H, W), dtype=jnp.float32)
    # Conv2d 1x1 weights squeezed to (out, in).
    w1 = 0.1 * jax.random.normal(kw1, (INTER_C, IN_C), dtype=jnp.float32)
    b1 = 0.1 * jax.random.normal(kb1, (INTER_C,), dtype=jnp.float32)
    w2 = 0.1 * jax.random.normal(kw2, (OUT_C, INTER_C), dtype=jnp.float32)
    b2 = 0.1 * jax.random.normal(kb2, (OUT_C,), dtype=jnp.float32)

    out = pem_forward(x, w1, b1, w2, b2)
    out = jax.block_until_ready(out)

    ref = jax.block_until_ready(pem_reference(x, w1, b1, w2, b2))
    assert out.shape == (B, OUT_C, H, W)
    assert jnp.allclose(out, ref, atol=1e-3, rtol=1e-3), "mismatch vs reference"

    print("KERNEL_OK")
</pallas_src>

<mosaic_0001>
module attributes {stable_mosaic.version = 11 : i64} {
  func.func @_pem_kernel(%arg0: i32, %arg1: memref<1x4x256xf32, #tpu.memory_space<vmem>>, %arg2: memref<8x4xf32, #tpu.memory_space<vmem>>, %arg3: memref<8x1xf32, #tpu.memory_space<vmem>>, %arg4: memref<8x8xf32, #tpu.memory_space<vmem>>, %arg5: memref<8x1xf32, #tpu.memory_space<vmem>>, %arg6: memref<1x8x256xf32, #tpu.memory_space<vmem>>) attributes {dimension_semantics = [#tpu.dimension_semantics<parallel>], iteration_bounds = array<i64: 2>, scalar_prefetch = 0 : i64, scratch_operands = 0 : i64, tpu.core_type = #tpu.core_type<tc>, window_params = [{transform_indices = @transform_0, window_bounds = array<i64: 1, 4, 256>}, {pipeline_mode = #tpu.pipeline_mode<synchronous>, transform_indices = @transform_1, window_bounds = array<i64: 8, 4>}, {pipeline_mode = #tpu.pipeline_mode<synchronous>, transform_indices = @transform_2, window_bounds = array<i64: 8, 1>}, {pipeline_mode = #tpu.pipeline_mode<synchronous>, transform_indices = @transform_3, window_bounds = array<i64: 8, 8>}, {pipeline_mode = #tpu.pipeline_mode<synchronous>, transform_indices = @transform_4, window_bounds = array<i64: 8, 1>}, {transform_indices = @transform_5, window_bounds = array<i64: 1, 8, 256>}]} {
    %c0 = arith.constant 0 : index
    %c0_0 = arith.constant 0 : index
    %c0_1 = arith.constant 0 : index
    %0 = vector.load %arg1[%c0, %c0_0, %c0_1] : memref<1x4x256xf32, #tpu.memory_space<vmem>>, vector<1x4x256xf32>
    %c0_2 = arith.constant 0 : index
    %c0_3 = arith.constant 0 : index
    %1 = vector.load %arg2[%c0_2, %c0_3] : memref<8x4xf32, #tpu.memory_space<vmem>>, vector<8x4xf32>
    %c0_4 = arith.constant 0 : index
    %c0_5 = arith.constant 0 : index
    %2 = vector.load %arg4[%c0_4, %c0_5] : memref<8x8xf32, #tpu.memory_space<vmem>>, vector<8x8xf32>
    %3 = vector.shape_cast %1 : vector<8x4xf32> to vector<1x8x4xf32>
    %cst = arith.constant dense<0.000000e+00> : vector<1x8x256xf32>
    %4 = tpu.matmul %3, %0, %cst {dimension_numbers = #tpu.dot_dimension_numbers<[2], [1], [1], [2], [0, 0, 0, 1, 1, 2], [0], [0]>} : vector<1x8x4xf32>, vector<1x4x256xf32>, vector<1x8x256xf32> -> vector<1x8x256xf32>
    %c0_6 = arith.constant 0 : index
    %c0_7 = arith.constant 0 : index
    %5 = vector.load %arg3[%c0_6, %c0_7] : memref<8x1xf32, #tpu.memory_space<vmem>>, vector<8x1xf32>
    %6 = vector.shape_cast %5 : vector<8x1xf32> to vector<1x8x1xf32>
    %7 = vector.broadcast %6 : vector<1x8x1xf32> to vector<1x8x256xf32>
    %8 = arith.addf %4, %7 : vector<1x8x256xf32>
    %9 = vector.shape_cast %2 : vector<8x8xf32> to vector<1x8x8xf32>
    %cst_8 = arith.constant dense<0.000000e+00> : vector<1x8x256xf32>
    %10 = tpu.matmul %9, %8, %cst_8 {dimension_numbers = #tpu.dot_dimension_numbers<[2], [1], [1], [2], [0, 0, 0, 1, 1, 2], [0], [0]>} : vector<1x8x8xf32>, vector<1x8x256xf32>, vector<1x8x256xf32> -> vector<1x8x256xf32>
    %c0_9 = arith.constant 0 : index
    %c0_10 = arith.constant 0 : index
    %11 = vector.load %arg5[%c0_9, %c0_10] : memref<8x1xf32, #tpu.memory_space<vmem>>, vector<8x1xf32>
    %12 = vector.shape_cast %11 : vector<8x1xf32> to vector<1x8x1xf32>
    %13 = vector.broadcast %12 : vector<1x8x1xf32> to vector<1x8x256xf32>
    %14 = arith.addf %10, %13 : vector<1x8x256xf32>
    %cst_11 = arith.constant dense<0.000000e+00> : vector<1x8x8xf32>
    %15 = tpu.matmul %14, %14, %cst_11 {dimension_numbers = #tpu.dot_dimension_numbers<[2], [2], [1], [1], [0, 0, 0, 1, 1, 1], [0], [0]>} : vector<1x8x256xf32>, vector<1x8x256xf32>, vector<1x8x8xf32> -> vector<1x8x8xf32>
    %cst_12 = arith.constant dense<0xFF800000> : vector<1x8xf32>
    %16 = vector.multi_reduction <maximumf>, %15, %cst_12 [2] : vector<1x8x8xf32> to vector<1x8xf32>
    %17 = vector.shape_cast %16 : vector<1x8xf32> to vector<1x8x1xf32>
    %18 = vector.broadcast %17 : vector<1x8x1xf32> to vector<1x8x8xf32>
    %19 = arith.subf %15, %18 : vector<1x8x8xf32>
    %20 = math.exp %19 : vector<1x8x8xf32>
    %cst_13 = arith.constant dense<0.000000e+00> : vector<1x8xf32>
    %21 = vector.multi_reduction <add>, %20, %cst_13 [2] : vector<1x8x8xf32> to vector<1x8xf32>
    %22 = vector.shape_cast %21 : vector<1x8xf32> to vector<1x8x1xf32>
    %23 = vector.broadcast %22 : vector<1x8x1xf32> to vector<1x8x8xf32>
    %24 = arith.divf %20, %23 : vector<1x8x8xf32>
    %cst_14 = arith.constant dense<0.000000e+00> : vector<1x8x256xf32>
    %25 = tpu.matmul %24, %8, %cst_14 {dimension_numbers = #tpu.dot_dimension_numbers<[2], [1], [1], [2], [0, 0, 0, 1, 1, 2], [0], [0]>} : vector<1x8x8xf32>, vector<1x8x256xf32>, vector<1x8x256xf32> -> vector<1x8x256xf32>
    %c0_15 = arith.constant 0 : index
    %c0_16 = arith.constant 0 : index
    %c0_17 = arith.constant 0 : index
    %26 = vector.load %arg6[%c0_15, %c0_16, %c0_17] : memref<1x8x256xf32, #tpu.memory_space<vmem>>, vector<1x8x256xf32>
    tpu.vector_store %arg6[%c0_15, %c0_16, %c0_17], %25 {strides = array<i32>} : memref<1x8x256xf32, #tpu.memory_space<vmem>>, vector<1x8x256xf32>,
    return
  }
  func.func @transform_0(%arg0: i32) -> (i32, i32, i32) {
    %c0_i32 = arith.constant 0 : i32
    %c0_i32_0 = arith.constant 0 : i32
    %c0_i32_1 = arith.constant 0 : i32
    return %arg0, %c0_i32, %c0_i32_0 : i32, i32, i32
  }
  func.func @transform_1(%arg0: i32) -> (i32, i32) {
    %c0_i32 = arith.constant 0 : i32
    %c0_i32_0 = arith.constant 0 : i32
    %c0_i32_1 = arith.constant 0 : i32
    return %c0_i32, %c0_i32_0 : i32, i32
  }
  func.func @transform_2(%arg0: i32) -> (i32, i32) {
    %c0_i32 = arith.constant 0 : i32
    %c0_i32_0 = arith.constant 0 : i32
    %c0_i32_1 = arith.constant 0 : i32
    return %c0_i32, %c0_i32_0 : i32, i32
  }
  func.func @transform_3(%arg0: i32) -> (i32, i32) {
    %c0_i32 = arith.constant 0 : i32
    %c0_i32_0 = arith.constant 0 : i32
    %c0_i32_1 = arith.constant 0 : i32
    return %c0_i32, %c0_i32_0 : i32, i32
  }
  func.func @transform_4(%arg0: i32) -> (i32, i32) {
    %c0_i32 = arith.constant 0 : i32
    %c0_i32_0 = arith.constant 0 : i32
    %c0_i32_1 = arith.constant 0 : i32
    return %c0_i32, %c0_i32_0 : i32, i32
  }
  func.func @transform_5(%arg0: i32) -> (i32, i32, i32) {
    %c0_i32 = arith.constant 0 : i32
    %c0_i32_0 = arith.constant 0 : i32
    %c0_i32_1 = arith.constant 0 : i32
    return %arg0, %c0_i32, %c0_i32_0 : i32, i32, i32
  }
}

</mosaic_0001>

<bundles_post_ra>
// kernel: tpu_custom_call.1
= control target key start
LH: loop header
LB: loop body
LE: loop exit
PB: predicated region body
PF: predicated region fallthrough
CT: control target
= control target key end

     0   :  { %10 = vsyncpa [#allocation3], 0  ;;  %s905_s0 = inlined_call_operand.vmem [shape: f32[2,4,256], index: 0, kind: input, shape index: {}]   ;;  %s906_s1 = inlined_call_operand.vmem [shape: f32[8,4], index: 1, kind: input, shape index: {}]   ;;  %s907_s2 = inlined_call_operand.vmem [shape: f32[8,1], index: 2, kind: input, shape index: {}]   ;;  %s908_s3 = inlined_call_operand.vmem [shape: f32[8,8], index: 3, kind: input, shape index: {}]   ;;  %s909_s4 = inlined_call_operand.vmem [shape: f32[8,1], index: 4, kind: input, shape index: {}]   ;;  %s910_s5 = inlined_call_operand.hbm [shape: f32[2,8,256], index: 5, kind: output, shape index: {}]  }
   0x1   :  { %12 = vsyncpa [#allocation3 + $0x1], 0  ;;  %s789_s18 = smov 0   ;;  %s791_s19 = smov 0  }
   0x2   :  { %s793_s20 = smov 0   ;;  %s795_s21 = smov 0  }
   0x3 LB: > { %s810_s22 = sadd.s32 4294967295, %s754_s21   ;;  %s626_s23 = sadd.s32 4294967294, %s754_s21   ;;  %s754_s21 = sphi %s795_s21, %s916_s21   ;;  %s750_s20 = sphi %s793_s20, %s915_s20   ;;  %s746_s19 = sphi %s791_s19, %s914_s19   ;;  %s742_s18 = sphi %s789_s18, %s913_s18  }
   0x4   : > { %s814_s24 = sadd.s32 1, %s754_s21   ;;  %s135_s25 = sadd.s32 1, %s750_s20 }
   0x5   : > { %s132_s26 = ssub.s32 %s754_s21, %s814_s24  ;;  %p145_p0 = scmp.ne.s32.totalorder %s750_s20, %s746_s19 }
   0x6   : > { %p133_p1 = scmp.eq.s32.totalorder %s132_s26, 0  ;;  %p146_p2 = scmp.eq.s32.totalorder %s810_s22, 1 }
   0x7   : > { %p151_p3 = scmp.ne.s32.totalorder %s746_s19, %s742_s18  ;;  %p152_p4 = scmp.eq.s32.totalorder %s626_s23, 1 }
   0x8   : > { %s825_s27 = scalar_select %p133_p1, %s750_s20, %s135_s25  }
   0x9   : > { %p827_p5 = por %p146_p2, %p145_p0  ;;  %p831_p6 = por %p152_p4, %p151_p3 }
   0xa   : > { %p629_p7 = scmp.ge.s32.totalorder %s754_s21, 1  ;;  %p190_p8 = scmp.lt.s32.totalorder %s754_s21, 3 }
   0xc   : > { %p191_p9 = pnand %p629_p7, %p190_p8 }
   0xd   : > { %p218_p10 = scmp.lt.s32.totalorder (!%p191_p9), %s810_s22, 1  ;;  %v756_v0 = vmov (!%p191_p9), 0.0   ;;  %v757_v1 = vmov (!%p191_p9), 0   ;;  %v226_v2 = vld [vmem:[%s907_s2] sm:$0xff] (!%p191_p9)  ;;  %vm238_vm0 = vcmask (!%p191_p9), 1043456   ;;  %vm234_vm1 = vcmask (!%p191_p9), 31744  }
   0xe   : > { %194 = sbr.rel (%p191_p9) target bundleno = 1219 (0x4c3), region = 40  ;;  %307 = vmatprep.mubr.f32.mxu0 (!%p191_p9), %v756_v0  ;;  %686 = vset.pattern.permute.xlu0 (!%p191_p9), %v757_v1  ;;  %v314_v3 = vld [vmem:[%s909_s4] sm:$0xff] (!%p191_p9)  ;;  %vm320_vm2 = vcmask (!%p191_p9), 64512   ;;  %s215_s23 = sand.u32 (!%p191_p9), 1, %s746_s19  }
   0xf   : > { %229 = vperm.xlu0 (!%p191_p9), %686, %v226_v2   ;;  %388 = vmatprep.mubr.f32.mxu1 (!%p191_p9), %v756_v0  ;;  %v224_v6 = vld [vmem:[%s906_s1] sm:$0xff] (!%p191_p9)  ;;  %s630_s25 = sshll.u32 (!%p191_p9), %s215_s23, 4  ;;  %s644_s6 = sshll.u32 (!%p191_p9), %s810_s22, 8 }
  0x10   : > { %v225_v12 = vld [vmem:[%s908_s3] sm:$0xff] (!%p191_p9)  ;;  %s217_s26 = scalar_lea.vmem (!%p191_p9), [#allocation2], %s630_s25  ;;  %s865_s9 = scalar_lea.hbm (!%p191_p9), %s910_s5, %s644_s6 }
  0x11   : > { %s567_s30 = sshll.u32 (!%p191_p9), %s217_s26, 4  ;;  %s860_s30 = int_to_ptr.vmem [resolvable:$true] %s567_s30 }
  0x12   : > { %s692_s11 = scalar_lea.vmem (!%p191_p9), %s860_s30, 256 }
  0x13   : > { %317 = vperm.xlu0 (!%p191_p9), %686, %v314_v3   ;;  %p693_p11 = scmp.ne.s32.totalorder (!%p191_p9), %s860_s30, %s692_s11 }
  0x15   : > { %s219_s7 = scalar_select %p218_p10, %s810_s22, 1 }
  0x16   : > { %p694_p12 = pnand %p693_p11, %p827_p5  ;;  %s758_s22 = smov [#allocation2]  }
  0x17   : > { %s643_s10 = sshll.u32 %s219_s7, 3  ;;  %s696_s12 = sshll.u32 %s758_s22, 4  ;;  %s697_s12 = int_to_ptr.vmem [resolvable:$false] %s696_s12 }
  0x18   : > { %s222_s13 = scalar_lea.vmem %s905_s0, %s643_s10  ;;  %s553_s10 = scalar_lea.sflag [#allocation3], %s215_s23 }
  0x19   : > { %v223_v4 = vld [vmem:[%s222_s13] sm:$0xff]  ;;  %p695_p13 = pneg %p694_p12  ;;  %s698_s13 = scalar_lea.vmem %s697_s12, 512 }
  0x1a   : > { %v233_v5 = vcombine.high %v223_v4, %v223_v4  ;;  %p699_p0 = scmp.lt.s32.totalorder %s860_s30, %s697_s12  ;;  %p700_p1 = scmp.lt.s32.totalorder %s698_s13, %s692_s11 }
  0x1c   : > { %633 = vmatprep.subr.msk.mxu0 %vm238_vm0, %v233_v5  ;;  %p701_p2 = por %p700_p1, %p699_p0 }
  0x1d   : > { %634 = vmatpush1.msk.msra.mxu0 %vm238_vm0, %v223_v4 }
  0x1e   : > { %635 = vmatmul.mubr.msk.f32.vlgmr.msra.gmra.mrb[0].mxu0 %vm234_vm1, %v224_v6  ;;  %p702_p3 = pnand %p701_p2, %p695_p13 }
  0x8e   : > { %v230_v8 = vpop.permute.xlu0 %229 }
  0x92   : > { %v318_v14 = vpop.permute.xlu0 %317 }
  0xf1   : > { %v309_v7 = vpop.f32.mrb[0].mxu0 }
  0xf2   : > { %v311_v9 = vpop.f32.mrb[1].mxu0  ;;  %v310_v11 = vadd.f32 %v309_v7, %v230_v8 }
  0xf3   : > { %v312_v10 = vadd.f32 %v311_v9, %v230_v8 }
  0xf5   : > { %324 = vmatprep.subr.mxu1 %v312_v10 }
  0xf6   : > { %325 = vmatpush1.msra.mxu1 %v310_v11 }
  0xf7   : > { %636 = vmatmul.mubr.msk.f32.vlgmr.msra.gmra.mrb[0].mxu1 %vm320_vm2, %v225_v12  ;;  %479 = vmatprep.subr.mxu1 %v312_v10 }
  0xf8   : > { %480 = vmatpush1.msra.mxu1 %v310_v11  ;;  %543 = vmatprep.mubr.f32.mxu1 %v756_v0 }
 0x1ca   : > { %v390_v13 = vpop.f32.mrb[0].mxu1 }
 0x1cb   : > { %v392_v15 = vpop.f32.mrb[1].mxu1  ;;  %v391_v17 = vadd.f32 %v390_v13, %v318_v14 }
 0x1cc   : > { %v393_v16 = vadd.f32 %v392_v15, %v318_v14 }
 0x1ce   : > { %395 = vmatprep.subr.mxu0 %v393_v16  ;;  %459 = vmatprep.mubr.f32.mxu0 %v393_v16 }
 0x1cf   : > { %396 = vmatpush1.xpose.msra.mxu0 %v391_v17 }
 0x1d2   : > { %460 = vmatmul.mubr.f32.vlgmr.msra.gmra.mrb[2].mxu0 %v391_v17 }
 0x2a5   : > { %v461_v18 = vpop.f32.mrb[2].mxu0 }
 0x2a6   : > { %v463_v19 = vpop.f32.mrb[3].mxu0  ;;  %v465_v20 = vsel %vm320_vm2, %v461_v18, -inf }
 0x2a7   : > { %466 = vmax.xlane.f32.xlu1 %v465_v20 }
 0x334   : > { %v467_v21 = vpop.xlane.xlu1 %466 }
 0x335   : > { %v468_v22 = vsub.f32 %v461_v18, %v467_v21 }
 0x337   : > { %v469_v23 = vmul.f32 1.442695, %v468_v22 }
 0x339   : > { %688 = vpow2.f32 %v469_v23 }
 0x343   : > { %v689_v24 = vpop.eup %688 }
 0x344   : > { %v471_v25 = vsel %vm320_vm2, %v689_v24, 0.0 }
 0x345   : > { %472 = vadd.xlane.f32.xlu1 %v471_v25 }
 0x3d2   : > { %v473_v26 = vpop.xlane.xlu1 %472 }
 0x3d3   : > { %690 = vrcp.f32 %v473_v26 }
 0x3dd   : > { %v691_v27 = vpop.eup %690 }
 0x3de   : > { %v475_v28 = vmul.f32 %v691_v27, %v689_v24 }
 0x3e0   : > { %637 = vmatmul.mubr.msk.f32.vlgmr.msra.gmra.mrb[2].mxu1 %vm320_vm2, %v475_v28 }
 0x4b3   : > { %v545_v29 = vpop.f32.mrb[2].mxu1 }
 0x4b4   : > { %550 = vst [vmem:[%s217_s26] sm:$0xff] %v545_v29  ;;  %v547_v30 = vpop.f32.mrb[3].mxu1 }
 0x4b5   : > { %551 = vst [vmem:[%s217_s26 + $0x8] sm:$0xff] %v547_v30 }
 0x4b6   : > { %705 = shalt.err (!%p702_p3)
}
 0x4b7   : > { %s706_s14 = scalar_lea.hbm %s865_s9, 256  ;;  %s710_s17 = scalar_lea.hbm %s910_s5, 512 }
 0x4b8   : > { %p707_p4 = scmp.ne.s32.totalorder %s865_s9, %s706_s14  ;;  %p711_p9 = scmp.lt.u32.totalorder %s865_s9, %s910_s5 }
 0x4b9   : > { %p712_p10 = scmp.lt.u32.totalorder %s710_s17, %s706_s14  ;;  %p714_p12 = scmp.lt.u32.totalorder %s706_s14, %s865_s9 }
 0x4ba   : > { %p708_p7 = pnand %p707_p4, %p827_p5 }
 0x4bb   : > { %p713_p11 = por %p712_p10, %p711_p9 }
 0x4bc   : > { %p709_p8 = pneg %p708_p7 }
 0x4bd   : > { %p715_p13 = por %p714_p12, %p713_p11 }
 0x4bf   : > { %p716_p0 = pnand %p715_p13, %p709_p8 }
 0x4c1   : > { %719 = shalt.err (!%p716_p0)
}
 0x4c2   : > { %645 = dma.vmem_to_hbm [thread:$0]  (%p827_p5), %s860_s30, 256, %s865_s9, %s553_s10  }
 0x4c3 PF: > { %p651_p1 = scmp.ge.s32.totalorder %s754_s21, 2  ;;  %s579_s26 = sand.u32 1, %s742_s18  }
 0x4c4   : > { %s580_s6 = scalar_lea.sflag [#allocation3], %s579_s26 }
 0x4c5   : > { %p648_p2 = pnand %p651_p1, %p831_p6 }
 0x4c7   : > { %737 = dma.done.wait (!%p648_p2), %s580_s6, 256  }
 0x4c8   : > { %739 = vsyncadd (!%p648_p2), %s580_s6, 4294967040  ;;  %p15_p3 = scmp.ge.s32.totalorder %s814_s24, 4   ;;  %s913_s18 = smov %s746_s19 }
 0x4c9   : > { %s914_s19 = smov %s750_s20  ;;  %s915_s20 = smov %s825_s27 }
 0x4ca   : > { %s916_s21 = smov %s814_s24  ;;  %17 = sbr.rel (!%p15_p3) target bundleno = 3 (0x3), region = 75 }
 0x4d1   :  { %585 = vsyncpa [#allocation3], 1 }
 0x4d2   :  { %587 = vsyncpa [#allocation3 + $0x1], 1 }

</bundles_post_ra>
